<compile_context>
chip_gen: v7x
topology: tpu7x:2x2x1
jax: 0.10.0
libtpu: 0.0.40
codegen_flags: <defaults>
</compile_context>

<pallas_src>
import jax
import jax.numpy as jnp
from jax.experimental import pallas as pl
from jax.experimental.pallas import tpu as pltpu

LANES = 128


def _energy_forces_loss_kernel(w_ref, e_r_ref, e_p_ref, f_r_ref, f_p_ref,
                               out_ref, acc_ref):
    # w_ref: SMEM (2,) -> [energy_weight / n_graphs, forces_weight / (3*n_atoms)]
    pid = pl.program_id(0)

    @pl.when(pid == 0)
    def _():
        acc_ref[...] = jnp.zeros_like(acc_ref)

    # Forces partial sum-of-squares for this block; accumulate lane-wise
    # partials in f32 (better precision than a single running scalar).
    df = f_r_ref[...].astype(jnp.float32) - f_p_ref[...].astype(jnp.float32)
    acc_ref[...] += jnp.sum(df * df, axis=0, keepdims=True)

    @pl.when(pid == pl.num_programs(0) - 1)
    def _():
        de = e_r_ref[...].astype(jnp.float32) - e_p_ref[...].astype(jnp.float32)
        sum_e = jnp.sum(de * de)
        sum_f = jnp.sum(acc_ref[...])
        # 1/N already folded into the weights.
        out_ref[0, 0] = w_ref[0] * sum_e + w_ref[1] * sum_f


def energy_forces_loss(ref_energy, pred_energy, ref_forces, pred_forces,
                       energy_weight=1.0, forces_weight=1.0,
                       block_rows=1024):
    """Pallas equivalent of EnergyForcesLoss.forward.

    ref_energy/pred_energy: (n_graphs,)
    ref_forces/pred_forces: (n_atoms, 3)
    Returns a scalar float32.
    """
    n_graphs = ref_energy.shape[0]
    n_force_elems = ref_forces.size  # n_atoms * 3

    # Energies on the lane axis; block equals full array so no padding needed.
    e_r = ref_energy.reshape(1, n_graphs)
    e_p = pred_energy.reshape(1, n_graphs)

    # Lane-dense forces: flatten and zero-pad to (padded_rows, 128) where
    # padded_rows is a multiple of block_rows. Identical padding for ref/pred
    # means the padded region contributes exactly zero to the squared error.
    n_rows = max(1, -(-n_force_elems // LANES))
    block_rows = max(8, min(block_rows, -(-n_rows // 8) * 8))
    padded_rows = -(-n_rows // block_rows) * block_rows
    padded_elems = padded_rows * LANES

    def _flatten_pad(f):
        flat = f.reshape(-1)
        flat = jnp.pad(flat, (0, padded_elems - n_force_elems))
        return flat.reshape(padded_rows, LANES)

    f_r = _flatten_pad(ref_forces)
    f_p = _flatten_pad(pred_forces)

    # Fold the 1/N normalisations (true counts, not padded counts) into the
    # SMEM weights so the kernel epilogue has no divides.
    weights = jnp.array(
        [energy_weight / n_graphs, forces_weight / n_force_elems],
        dtype=jnp.float32)

    n_blocks = padded_rows // block_rows

    out = pl.pallas_call(
        _energy_forces_loss_kernel,
        out_shape=jax.ShapeDtypeStruct((1, 1), jnp.float32),
        grid_spec=pltpu.PrefetchScalarGridSpec(
            num_scalar_prefetch=0,
            grid=(n_blocks,),
            in_specs=[
                pl.BlockSpec(memory_space=pltpu.SMEM),                 # weights
                pl.BlockSpec((1, n_graphs), lambda i: (0, 0)),         # ref E
                pl.BlockSpec((1, n_graphs), lambda i: (0, 0)),         # pred E
                pl.BlockSpec((block_rows, LANES), lambda i: (i, 0)),   # ref F
                pl.BlockSpec((block_rows, LANES), lambda i: (i, 0)),   # pred F
            ],
            out_specs=pl.BlockSpec(memory_space=pltpu.SMEM),           # scalar
            scratch_shapes=[pltpu.VMEM((1, LANES), jnp.float32)],      # acc
        ),
        compiler_params=pltpu.CompilerParams(
            dimension_semantics=("arbitrary",)),  # reduction axis
    )(weights, e_r, e_p, f_r, f_p)
    return out[0, 0]


def _reference_loss(ref_energy, pred_energy, ref_forces, pred_forces,
                    energy_weight, forces_weight):
    return (energy_weight * jnp.mean(jnp.square(ref_energy - pred_energy))
            + forces_weight * jnp.mean(jnp.square(ref_forces - pred_forces)))


if __name__ == "__main__":
    key = jax.random.PRNGKey(0)

    # --- small case (single grid step) ---------------------------------
    k1, k2, k3, k4, k5, k6, k7, k8 = jax.random.split(key, 8)
    n_graphs, n_atoms = 8, 32
    ref_energy = jax.random.normal(k1, (n_graphs,), dtype=jnp.float32)
    pred_energy = jax.random.normal(k2, (n_graphs,), dtype=jnp.float32)
    ref_forces = jax.random.normal(k3, (n_atoms, 3), dtype=jnp.float32)
    pred_forces = jax.random.normal(k4, (n_atoms, 3), dtype=jnp.float32)
    ew, fw = 1.0, 10.0

    loss = energy_forces_loss(ref_energy, pred_energy, ref_forces, pred_forces,
                              energy_weight=ew, forces_weight=fw)
    loss = jax.block_until_ready(loss)
    ref_loss = _reference_loss(ref_energy, pred_energy, ref_forces, pred_forces,
                               ew, fw)
    assert jnp.allclose(loss, ref_loss, rtol=1e-5, atol=1e-5), (loss, ref_loss)

    # --- multi-block case (exercises accumulator across grid steps) -----
    n_graphs2, n_atoms2 = 4, 1000  # 3000 force elems -> 24 rows, block_rows=8 -> 3 blocks
    ref_energy2 = jax.random.normal(k5, (n_graphs2,), dtype=jnp.float32)
    pred_energy2 = jax.random.normal(k6, (n_graphs2,), dtype=jnp.float32)
    ref_forces2 = jax.random.normal(k7, (n_atoms2, 3), dtype=jnp.float32)
    pred_forces2 = jax.random.normal(k8, (n_atoms2, 3), dtype=jnp.float32)

    loss2 = energy_forces_loss(ref_energy2, pred_energy2, ref_forces2,
                               pred_forces2, energy_weight=0.5,
                               forces_weight=2.0, block_rows=8)
    loss2 = jax.block_until_ready(loss2)
    ref_loss2 = _reference_loss(ref_energy2, pred_energy2, ref_forces2,
                                pred_forces2, 0.5, 2.0)
    assert jnp.allclose(loss2, ref_loss2, rtol=1e-5, atol=1e-5), (loss2, ref_loss2)

    print("KERNEL_OK")
</pallas_src>

<mosaic_0001>
module attributes {stable_mosaic.version = 11 : i64} {
  func.func @_energy_forces_loss_kernel(%arg0: i32, %arg1: memref<2xf32, #tpu.memory_space<smem>>, %arg2: memref<1x8xf32, #tpu.memory_space<vmem>>, %arg3: memref<1x8xf32, #tpu.memory_space<vmem>>, %arg4: memref<8x128xf32, #tpu.memory_space<vmem>>, %arg5: memref<8x128xf32, #tpu.memory_space<vmem>>, %arg6: memref<1x1xf32, #tpu.memory_space<smem>>, %arg7: memref<1x128xf32, #tpu.memory_space<vmem>>) attributes {dimension_semantics = [#tpu.dimension_semantics<arbitrary>], iteration_bounds = array<i64: 1>, scalar_prefetch = 0 : i64, scratch_operands = 1 : i64, tpu.core_type = #tpu.core_type<tc>, window_params = [{transform_indices = @transform_0, window_bounds = array<i64: 2>}, {pipeline_mode = #tpu.pipeline_mode<synchronous>, transform_indices = @transform_1, window_bounds = array<i64: 1, 8>}, {pipeline_mode = #tpu.pipeline_mode<synchronous>, transform_indices = @transform_2, window_bounds = array<i64: 1, 8>}, {transform_indices = @transform_3, window_bounds = array<i64: 8, 128>}, {transform_indices = @transform_4, window_bounds = array<i64: 8, 128>}, {transform_indices = @transform_5, window_bounds = array<i64: 1, 1>}]} {
    %c0_i32 = arith.constant 0 : i32
    %0 = arith.cmpi eq, %arg0, %c0_i32 : i32
    %1 = arith.extui %0 : i1 to i32
    %c0_i32_0 = arith.constant 0 : i32
    %2 = arith.cmpi ne, %1, %c0_i32_0 : i32
    scf.if %2 {
      %cst_10 = arith.constant 0.000000e+00 : f32
      %15 = vector.broadcast %cst_10 : f32 to vector<1x128xf32>
      %c0_11 = arith.constant 0 : index
      %c0_12 = arith.constant 0 : index
      %16 = vector.load %arg7[%c0_11, %c0_12] : memref<1x128xf32, #tpu.memory_space<vmem>>, vector<1x128xf32>
      tpu.vector_store %arg7[%c0_11, %c0_12], %15 {strides = array<i32>} : memref<1x128xf32, #tpu.memory_space<vmem>>, vector<1x128xf32>,
    } else {
    }
    %c0 = arith.constant 0 : index
    %c0_1 = arith.constant 0 : index
    %3 = vector.load %arg4[%c0, %c0_1] : memref<8x128xf32, #tpu.memory_space<vmem>>, vector<8x128xf32>
    %c0_2 = arith.constant 0 : index
    %c0_3 = arith.constant 0 : index
    %4 = vector.load %arg5[%c0_2, %c0_3] : memref<8x128xf32, #tpu.memory_space<vmem>>, vector<8x128xf32>
    %5 = arith.subf %3, %4 : vector<8x128xf32>
    %c0_4 = arith.constant 0 : index
    %c0_5 = arith.constant 0 : index
    %6 = vector.load %arg7[%c0_4, %c0_5] : memref<1x128xf32, #tpu.memory_space<vmem>>, vector<1x128xf32>
    %7 = arith.mulf %5, %5 : vector<8x128xf32>
    %cst = arith.constant dense<0.000000e+00> : vector<128xf32>
    %8 = vector.multi_reduction <add>, %7, %cst [0] : vector<8x128xf32> to vector<128xf32>
    %9 = vector.shape_cast %8 : vector<128xf32> to vector<1x128xf32>
    %10 = arith.addf %6, %9 : vector<1x128xf32>
    %c0_6 = arith.constant 0 : index
    %c0_7 = arith.constant 0 : index
    %11 = vector.load %arg7[%c0_6, %c0_7] : memref<1x128xf32, #tpu.memory_space<vmem>>, vector<1x128xf32>
    tpu.vector_store %arg7[%c0_6, %c0_7], %10 {strides = array<i32>} : memref<1x128xf32, #tpu.memory_space<vmem>>, vector<1x128xf32>,
    %c0_i32_8 = arith.constant 0 : i32
    %12 = arith.cmpi eq, %arg0, %c0_i32_8 : i32
    %13 = arith.extui %12 : i1 to i32
    %c0_i32_9 = arith.constant 0 : i32
    %14 = arith.cmpi ne, %13, %c0_i32_9 : i32
    scf.if %14 {
      %c0_10 = arith.constant 0 : index
      %c0_11 = arith.constant 0 : index
      %15 = vector.load %arg2[%c0_10, %c0_11] : memref<1x8xf32, #tpu.memory_space<vmem>>, vector<1x8xf32>
      %c0_12 = arith.constant 0 : index
      %c0_13 = arith.constant 0 : index
      %16 = vector.load %arg3[%c0_12, %c0_13] : memref<1x8xf32, #tpu.memory_space<vmem>>, vector<1x8xf32>
      %17 = arith.subf %15, %16 : vector<1x8xf32>
      %18 = arith.mulf %17, %17 : vector<1x8xf32>
      %19 = vector.shape_cast %18 : vector<1x8xf32> to vector<1x1x8xf32>
      %cst_14 = arith.constant dense<0.000000e+00> : vector<1xf32>
      %20 = vector.multi_reduction <add>, %19, %cst_14 [1, 2] : vector<1x1x8xf32> to vector<1xf32>
      %21 = vector.shape_cast %20 : vector<1xf32> to vector<1x1x1xf32>
      %22 = vector.extract %21[0, 0, 0] : f32 from vector<1x1x1xf32>
      %c0_15 = arith.constant 0 : index
      %c0_16 = arith.constant 0 : index
      %23 = vector.load %arg7[%c0_15, %c0_16] : memref<1x128xf32, #tpu.memory_space<vmem>>, vector<1x128xf32>
      %24 = vector.shape_cast %23 : vector<1x128xf32> to vector<1x1x128xf32>
      %cst_17 = arith.constant dense<0.000000e+00> : vector<1xf32>
      %25 = vector.multi_reduction <add>, %24, %cst_17 [1, 2] : vector<1x1x128xf32> to vector<1xf32>
      %26 = vector.shape_cast %25 : vector<1xf32> to vector<1x1x1xf32>
      %27 = vector.extract %26[0, 0, 0] : f32 from vector<1x1x1xf32>
      %c0_18 = arith.constant 0 : index
      %28 = memref.load %arg1[%c0_18] : memref<2xf32, #tpu.memory_space<smem>>
      %29 = arith.mulf %28, %22 : f32
      %c1 = arith.constant 1 : index
      %30 = memref.load %arg1[%c1] : memref<2xf32, #tpu.memory_space<smem>>
      %31 = arith.mulf %30, %27 : f32
      %32 = arith.addf %29, %31 : f32
      %c0_19 = arith.constant 0 : index
      %c0_20 = arith.constant 0 : index
      %33 = memref.load %arg6[%c0_19, %c0_20] : memref<1x1xf32, #tpu.memory_space<smem>>
      memref.store %32, %arg6[%c0_19, %c0_20] : memref<1x1xf32, #tpu.memory_space<smem>>
    } else {
    }
    return
  }
  func.func @transform_0(%arg0: i32) -> i32 {
    %c0_i32 = arith.constant 0 : i32
    %c0_i32_0 = arith.constant 0 : i32
    return %c0_i32 : i32
  }
  func.func @transform_1(%arg0: i32) -> (i32, i32) {
    %c0_i32 = arith.constant 0 : i32
    %c0_i32_0 = arith.constant 0 : i32
    %c0_i32_1 = arith.constant 0 : i32
    return %c0_i32, %c0_i32_0 : i32, i32
  }
  func.func @transform_2(%arg0: i32) -> (i32, i32) {
    %c0_i32 = arith.constant 0 : i32
    %c0_i32_0 = arith.constant 0 : i32
    %c0_i32_1 = arith.constant 0 : i32
    return %c0_i32, %c0_i32_0 : i32, i32
  }
  func.func @transform_3(%arg0: i32) -> (i32, i32) {
    %c0_i32 = arith.constant 0 : i32
    %c0_i32_0 = arith.constant 0 : i32
    return %arg0, %c0_i32 : i32, i32
  }
  func.func @transform_4(%arg0: i32) -> (i32, i32) {
    %c0_i32 = arith.constant 0 : i32
    %c0_i32_0 = arith.constant 0 : i32
    return %arg0, %c0_i32 : i32, i32
  }
  func.func @transform_5(%arg0: i32) -> (i32, i32) {
    %c0_i32 = arith.constant 0 : i32
    %c0_i32_0 = arith.constant 0 : i32
    %c0_i32_1 = arith.constant 0 : i32
    return %c0_i32, %c0_i32_0 : i32, i32
  }
}

</mosaic_0001>

<bundles_post_ra>
// kernel: tpu_custom_call.1
= control target key start
LH: loop header
LB: loop body
LE: loop exit
PB: predicated region body
PF: predicated region fallthrough
CT: control target
= control target key end

     0   :  { %10 = vsyncpa [#allocation5], 0  ;;  %s250_s0 = inlined_call_operand.hbm [shape: f32[2], index: 0, kind: input, shape index: {}]   ;;  %s251_s1 = inlined_call_operand.vmem [shape: f32[1,8], index: 1, kind: input, shape index: {}]   ;;  %s252_s2 = inlined_call_operand.vmem [shape: f32[1,8], index: 2, kind: input, shape index: {}]   ;;  %s253_s3 = inlined_call_operand.vmem [shape: f32[8,128], index: 3, kind: input, shape index: {}]   ;;  %s254_s4 = inlined_call_operand.hbm [shape: f32[8,128], index: 4, kind: input, shape index: {}]   ;;  %s255_s5 = inlined_call_operand.hbm [shape: f32[1,1], index: 5, kind: output, shape index: {}]  }
   0x1   :  { %11 = vsyncpa [#allocation4], 0 }
   0x2   :  { %12 = vsyncpa [#allocation6], 0  ;;  %s123_s20 = scalar_lea.hbm %s250_s0, 16 }
   0x3   :  { %p124_p0 = scmp.ne.s32.totalorder %s250_s0, %s123_s20  ;;  %p127_p1 = scmp.lt.u32.totalorder %s123_s20, %s250_s0 }
   0x5   :  { %p129_p2 = pnand %p127_p1, %p124_p0 }
   0x7   :  { %132 = shalt.err (!%p129_p2)
}
   0x8   :  { %s171_s25 = smov [#allocation3]   ;;  %s172_s28 = smov [#allocation7]  }
   0x9   :  { %20 = dma.hbm_to_smem %s250_s0, 16, %s171_s25, [#allocation5]  }
   0xa   :  { %s33_s29 = sshll.u32 %s172_s28, 4  ;;  %s133_s7 = scalar_lea.hbm %s254_s4, 128  ;;  %s34_s29 = int_to_ptr.vmem [resolvable:$true] %s33_s29 }
   0xb   :  { %p134_p3 = scmp.ne.s32.totalorder %s254_s4, %s133_s7  ;;  %p137_p4 = scmp.lt.u32.totalorder %s133_s7, %s254_s4 }
   0xd   :  { %p139_p5 = pnand %p137_p4, %p134_p3 }
   0xf   :  { %142 = shalt.err (!%p139_p5)
}
  0x10   :  { %s143_s12 = scalar_lea.vmem %s34_s29, 128  ;;  %p148_p7 = scmp.lt.s32.totalorder %s34_s29, %s34_s29 }
  0x11   :  { %p144_p6 = scmp.ne.s32.totalorder %s34_s29, %s143_s12  ;;  %p149_p8 = scmp.lt.s32.totalorder %s143_s12, %s143_s12 }
  0x13   :  { %p150_p9 = por %p149_p8, %p148_p7 }
  0x15   :  { %p151_p10 = pnand %p150_p9, %p144_p6 }
  0x17   :  { %154 = shalt.err (!%p151_p10)
}
  0x18   :  { %36 = dma.hbm_to_vmem [thread:$0]  %s254_s4, 128, %s34_s29, [#allocation4]  }
  0x19   :  { %165 = dma.done.wait [#allocation5], 16  }
  0x1a   :  { %166 = vsyncadd [#allocation5], 4294967280 }
  0x1b   :  { %167 = dma.done.wait [#allocation4], 128  }
  0x1c   :  { %168 = vsyncadd [#allocation4], 4294967168 }
  0x1d   :  { %43 = sfence }
  0x1e   :  { %v65_v0 = vld [vmem:[%s251_s1] sm:$0x1]  ;;  %v173_v3 = vmov 0.0   ;;  %v50_v5 = vld [vmem:[#allocation7] sm:$0xff]  ;;  %vm69_vm0 = vcmask 57344   ;;  %vm81_vm1 = vcmask 1040384  }
  0x1f   :  { %v66_v1 = vld [vmem:[%s252_s2] sm:$0x1]  ;;  %48 = vst [vmem:[#allocation2] sm:$0x1] %v173_v3  ;;  %s92_s1 = sld [smem:[#allocation3]]  ;;  %s114_s2 = sld [smem:[#allocation3 + $0x1]] }
  0x20   :  { %v67_v2 = vsub.f32 %v65_v0, %v66_v1  ;;  %v49_v4 = vld [vmem:[%s253_s3] sm:$0xff]  ;;  %s155_s25 = scalar_lea.hbm %s255_s5, 16 }
  0x21   :  { %v51_v6 = vsub.f32 %v49_v4, %v50_v5  ;;  %p156_p11 = scmp.ne.s32.totalorder %s255_s5, %s155_s25  ;;  %p159_p12 = scmp.lt.u32.totalorder %s155_s25, %s255_s5 }
  0x22   :  { %v68_v7 = vmul.f32 %v67_v2, %v67_v2 }
  0x23   :  { %v53_v8 = vmul.f32 %v51_v6, %v51_v6  ;;  %p161_p13 = pnand %p159_p12, %p156_p11 }
  0x24   :  { %v70_v9 = vsel %vm69_vm0, %v68_v7, 0.0 }
  0x25   :  { %71 = vadd.xlane.f32.xlu0 %v70_v9  ;;  %v54_v10 = vrot.slane %v53_v8, 4 }
  0x26   :  { %v52_v15 = vld [vmem:[#allocation2] sm:$0x1] }
  0x27   :  { %v55_v11 = vadd.f32 %v54_v10, %v53_v8 }
  0x29   :  { %v56_v12 = vrot.slane %v55_v11, 2 }
  0x2b   :  { %v57_v13 = vadd.f32 %v56_v12, %v55_v11 }
  0x2d   :  { %v58_v14 = vrot.slane %v57_v13, 1 }
  0x2f   :  { %v59_v16 = vadd.f32 %v58_v14, %v57_v13 }
  0x31   :  { %v60_v17 = vadd.f32 %v59_v16, %v52_v15 }
  0x33   :  { %61 = vst [vmem:[#allocation2] sm:$0x1] %v60_v17 }
  0x3a   :  { %v80_v18 = vld [vmem:[#allocation2] sm:$0x1] }
  0x3b   :  { %v82_v19 = vsel %vm81_vm1, %v80_v18, 0.0 }
  0x3c   :  { %83 = vadd.xlane.f32.xlu0 %v82_v19 }
  0xb2   :  { %v72_v20 = vpop.xlane.xlu0 %71 }
  0xb3   :  { %v73_v21 = vrot.slane %v72_v20, 4 }
  0xb5   :  { %v74_v22 = vadd.f32 %v73_v21, %v72_v20 }
  0xb7   :  { %v75_v23 = vrot.slane %v74_v22, 2 }
  0xb9   :  { %v76_v24 = vadd.f32 %v75_v23, %v74_v22 }
  0xbb   :  { %v77_v25 = vrot.slane %v76_v24, 1 }
  0xbd   :  { %v78_v26 = vadd.f32 %v77_v25, %v76_v24 }
  0xbf   :  { %115 = vpush %v78_v26 }
  0xc9   :  { %v84_v27 = vpop.xlane.xlu0 %83 }
  0xca   :  { %v85_v28 = vrot.slane %v84_v27, 4 }
  0xcc   :  { %v86_v29 = vadd.f32 %v85_v28, %v84_v27 }
  0xce   :  { %v87_v30 = vrot.slane %v86_v29, 2 }
  0xd0   :  { %v88_v31 = vadd.f32 %v87_v30, %v86_v29 }
  0xd2   :  { %v89_v32 = vrot.slane %v88_v31, 1 }
  0xd4   :  { %v90_v33 = vadd.f32 %v89_v32, %v88_v31 }
  0xd6   :  { %117 = vpush %v90_v33 }
  0xf0   :  { %s116_s3 = spop %115 }
  0xf1   :  { %s93_s4 = smul.f32 %s116_s3, %s92_s1 }
 0x107   :  { %s118_s20 = spop %117 }
 0x108   :  { %s95_s21 = smul.f32 %s118_s20, %s114_s2 }
 0x10a   :  { %s96_s22 = sadd.f32 %s95_s21, %s93_s4 }
 0x10c   :  { %98 = sst [smem:[#allocation8]] %s96_s22 }
 0x10d   :  { %164 = shalt.err (!%p161_p13)
}
 0x10e   :  { %s174_s30 = smov [#allocation8]  }
 0x10f   :  { %106 = dma.smem_to_hbm %s174_s30, 16, %s255_s5, [#allocation6]  }
 0x110   :  { %169 = dma.done.wait [#allocation6], 16  }
 0x111   :  { %170 = vsyncadd [#allocation6], 4294967280 }
 0x112   :  { %110 = sfence }
 0x113   :  { %111 = vsyncpa [#allocation4], 1 }
 0x114   :  { %112 = vsyncpa [#allocation5], 1 }
 0x115   :  { %113 = vsyncpa [#allocation6], 1 }

</bundles_post_ra>
